<compile_context>
chip_gen: v7x
topology: tpu7x:2x2x1
jax: 0.10.0
libtpu: 0.0.40
codegen_flags: <defaults>
</compile_context>

<pallas_src>
import jax
import jax.numpy as jnp
from jax.experimental import pallas as pl
from jax.experimental.pallas import tpu as pltpu


def _gelu_tanh(x):
    # tanh-approximate GELU, computed in f32 on VPU + EUP.
    c = jnp.float32(0.7978845608028654)  # sqrt(2/pi)
    return 0.5 * x * (1.0 + jnp.tanh(c * (x + 0.044715 * x * x * x)))


def mlp_kernel(x_ref, w1_ref, b1_ref, w2_ref, b2_ref, o_ref):
    # x_ref block: (block_m, C_in) rows of flattened tokens.
    x = x_ref[...]

    # fc1: bf16 MXU operands, f32 accumulation.
    h = jnp.dot(x.astype(jnp.bfloat16), w1_ref[...].astype(jnp.bfloat16),
                preferred_element_type=jnp.float32)
    h = h + b1_ref[...]                     # (block_m, H) + (1, H)

    # GELU in f32 (dropout p=0.0 -> identity).
    h = _gelu_tanh(h)

    # fc2: bf16 MXU operands, f32 accumulation.
    y = jnp.dot(h.astype(jnp.bfloat16), w2_ref[...].astype(jnp.bfloat16),
                preferred_element_type=jnp.float32)
    y = y + b2_ref[...]                     # (block_m, C_out) + (1, C_out)

    o_ref[...] = y.astype(o_ref.dtype)


def mlp_forward(x, w_fc1, b_fc1, w_fc2, b_fc2, *, block_m=None):
    B, N, C_in = x.shape
    H = w_fc1.shape[1]
    C_out = w_fc2.shape[1]
    M = B * N

    # Flatten tokens so the kernel sees fat, lane-dense 2-D tiles.
    x2d = x.reshape(M, C_in)

    if block_m is None:
        # Fat row blocks, but keep >= 2 grid steps (v7x megacore) and a
        # sublane-aligned (multiple of 8) block height.
        block_m = max(8, min(256, M // 2))
    assert M % block_m == 0 and block_m % 8 == 0
    grid = (M // block_m,)

    out2d = pl.pallas_call(
        mlp_kernel,
        out_shape=jax.ShapeDtypeStruct((M, C_out), x.dtype),
        grid=grid,
        in_specs=[
            pl.BlockSpec((block_m, C_in), lambda i: (i, 0)),   # x rows
            pl.BlockSpec((C_in, H), lambda i: (0, 0)),         # W_fc1 (full)
            pl.BlockSpec((1, H), lambda i: (0, 0)),            # b_fc1
            pl.BlockSpec((H, C_out), lambda i: (0, 0)),        # W_fc2 (full)
            pl.BlockSpec((1, C_out), lambda i: (0, 0)),        # b_fc2
        ],
        out_specs=pl.BlockSpec((block_m, C_out), lambda i: (i, 0)),
        compiler_params=pltpu.CompilerParams(
            dimension_semantics=("parallel",)),
    )(x2d, w_fc1, b_fc1.reshape(1, H), w_fc2, b_fc2.reshape(1, C_out))

    return out2d.reshape(B, N, C_out)


def mlp_reference_matched(x, w_fc1, b_fc1, w_fc2, b_fc2):
    """Plain-JAX reference using the same precision policy as the kernel
    (bf16 dot inputs, f32 accumulation, f32 element-wise, tanh GELU)."""
    B, N, C_in = x.shape
    xm = x.reshape(B * N, C_in)
    h = jnp.dot(xm.astype(jnp.bfloat16), w_fc1.astype(jnp.bfloat16),
                preferred_element_type=jnp.float32) + b_fc1
    h = _gelu_tanh(h)
    y = jnp.dot(h.astype(jnp.bfloat16), w_fc2.astype(jnp.bfloat16),
                preferred_element_type=jnp.float32) + b_fc2
    return y.reshape(B, N, -1).astype(x.dtype)


def mlp_reference_f32(x, w_fc1, b_fc1, w_fc2, b_fc2):
    """Full-f32 reference mirroring the PyTorch forward (tanh GELU)."""
    h = _gelu_tanh(x @ w_fc1 + b_fc1)
    return h @ w_fc2 + b_fc2


if __name__ == "__main__":
    # Small shapes consistent with a ViT-style MLP block; channel dims are
    # multiples of 128 so all tiles are lane-dense.
    B, N, C_IN, HIDDEN = 2, 16, 128, 256
    C_OUT = C_IN  # out_features defaults to in_features in the module

    key = jax.random.PRNGKey(0)
    kx, kw1, kb1, kw2, kb2 = jax.random.split(key, 5)
    x = jax.random.normal(kx, (B, N, C_IN), dtype=jnp.float32)
    # trunc_normal(std=0.02)-style weight scale; small non-zero biases to
    # exercise the bias-add path (PyTorch init zeros them).
    w_fc1 = jax.random.normal(kw1, (C_IN, HIDDEN), dtype=jnp.float32) * 0.02
    b_fc1 = jax.random.normal(kb1, (HIDDEN,), dtype=jnp.float32) * 0.02
    w_fc2 = jax.random.normal(kw2, (HIDDEN, C_OUT), dtype=jnp.float32) * 0.02
    b_fc2 = jax.random.normal(kb2, (C_OUT,), dtype=jnp.float32) * 0.02

    out = mlp_forward(x, w_fc1, b_fc1, w_fc2, b_fc2)
    out = jax.block_until_ready(out)
    assert out.shape == (B, N, C_OUT)

    # Exact-policy check (bf16 MXU inputs, f32 accumulate) — tight tolerance.
    ref_m = mlp_reference_matched(x, w_fc1, b_fc1, w_fc2, b_fc2)
    assert jnp.allclose(out, ref_m, atol=2e-3, rtol=2e-3), \
        "mismatch vs matched-precision reference"

    # Sanity check against a full-f32 reference — looser tolerance covers the
    # bf16 input rounding of the MXU operands.
    ref_f32 = mlp_reference_f32(x, w_fc1, b_fc1, w_fc2, b_fc2)
    assert jnp.allclose(out, ref_f32, atol=2e-2, rtol=2e-2), \
        "mismatch vs f32 reference"

    print("KERNEL_OK")
</pallas_src>

<mosaic_0001>
module attributes {stable_mosaic.version = 11 : i64} {
  func.func @mlp_kernel(%arg0: i32, %arg1: memref<16x128xf32, #tpu.memory_space<vmem>>, %arg2: memref<128x256xf32, #tpu.memory_space<vmem>>, %arg3: memref<1x256xf32, #tpu.memory_space<vmem>>, %arg4: memref<256x128xf32, #tpu.memory_space<vmem>>, %arg5: memref<1x128xf32, #tpu.memory_space<vmem>>, %arg6: memref<16x128xf32, #tpu.memory_space<vmem>>) attributes {dimension_semantics = [#tpu.dimension_semantics<parallel>], iteration_bounds = array<i64: 2>, scalar_prefetch = 0 : i64, scratch_operands = 0 : i64, tpu.core_type = #tpu.core_type<tc>, window_params = [{transform_indices = @transform_0, window_bounds = array<i64: 16, 128>}, {pipeline_mode = #tpu.pipeline_mode<synchronous>, transform_indices = @transform_1, window_bounds = array<i64: 128, 256>}, {pipeline_mode = #tpu.pipeline_mode<synchronous>, transform_indices = @transform_2, window_bounds = array<i64: 1, 256>}, {pipeline_mode = #tpu.pipeline_mode<synchronous>, transform_indices = @transform_3, window_bounds = array<i64: 256, 128>}, {pipeline_mode = #tpu.pipeline_mode<synchronous>, transform_indices = @transform_4, window_bounds = array<i64: 1, 128>}, {transform_indices = @transform_5, window_bounds = array<i64: 16, 128>}]} {
    %c0 = arith.constant 0 : index
    %c0_0 = arith.constant 0 : index
    %0 = vector.load %arg1[%c0, %c0_0] : memref<16x128xf32, #tpu.memory_space<vmem>>, vector<16x128xf32>
    %1 = arith.truncf %0 : vector<16x128xf32> to vector<16x128xbf16>
    %c0_1 = arith.constant 0 : index
    %c0_2 = arith.constant 0 : index
    %2 = vector.load %arg2[%c0_1, %c0_2] : memref<128x256xf32, #tpu.memory_space<vmem>>, vector<128x256xf32>
    %3 = arith.truncf %2 : vector<128x256xf32> to vector<128x256xbf16>
    %cst = arith.constant dense<0.000000e+00> : vector<16x256xf32>
    %4 = tpu.matmul %1, %3, %cst {dimension_numbers = #tpu.dot_dimension_numbers<[1], [0], [0], [1], [0, 0, 1, 1], [], []>} : vector<16x128xbf16>, vector<128x256xbf16>, vector<16x256xf32> -> vector<16x256xf32>
    %c0_3 = arith.constant 0 : index
    %c0_4 = arith.constant 0 : index
    %5 = vector.load %arg3[%c0_3, %c0_4] : memref<1x256xf32, #tpu.memory_space<vmem>>, vector<1x256xf32>
    %6 = vector.broadcast %5 : vector<1x256xf32> to vector<16x256xf32>
    %7 = arith.addf %4, %6 : vector<16x256xf32>
    %cst_5 = arith.constant 5.000000e-01 : f32
    %8 = vector.broadcast %cst_5 : f32 to vector<16x256xf32>
    %9 = arith.mulf %8, %7 : vector<16x256xf32>
    %cst_6 = arith.constant 4.471500e-02 : f32
    %10 = vector.broadcast %cst_6 : f32 to vector<16x256xf32>
    %11 = arith.mulf %10, %7 : vector<16x256xf32>
    %12 = arith.mulf %11, %7 : vector<16x256xf32>
    %13 = arith.mulf %12, %7 : vector<16x256xf32>
    %14 = arith.addf %7, %13 : vector<16x256xf32>
    %cst_7 = arith.constant 0.797884583 : f32
    %15 = vector.broadcast %cst_7 : f32 to vector<16x256xf32>
    %16 = arith.mulf %15, %14 : vector<16x256xf32>
    %17 = math.tanh %16 : vector<16x256xf32>
    %cst_8 = arith.constant 1.000000e+00 : f32
    %18 = vector.broadcast %cst_8 : f32 to vector<16x256xf32>
    %19 = arith.addf %18, %17 : vector<16x256xf32>
    %20 = arith.mulf %9, %19 : vector<16x256xf32>
    %21 = arith.truncf %20 : vector<16x256xf32> to vector<16x256xbf16>
    %c0_9 = arith.constant 0 : index
    %c0_10 = arith.constant 0 : index
    %22 = vector.load %arg4[%c0_9, %c0_10] : memref<256x128xf32, #tpu.memory_space<vmem>>, vector<256x128xf32>
    %23 = arith.truncf %22 : vector<256x128xf32> to vector<256x128xbf16>
    %cst_11 = arith.constant dense<0.000000e+00> : vector<16x128xf32>
    %24 = tpu.matmul %21, %23, %cst_11 {dimension_numbers = #tpu.dot_dimension_numbers<[1], [0], [0], [1], [0, 0, 1, 1], [], []>} : vector<16x256xbf16>, vector<256x128xbf16>, vector<16x128xf32> -> vector<16x128xf32>
    %c0_12 = arith.constant 0 : index
    %c0_13 = arith.constant 0 : index
    %25 = vector.load %arg5[%c0_12, %c0_13] : memref<1x128xf32, #tpu.memory_space<vmem>>, vector<1x128xf32>
    %26 = vector.broadcast %25 : vector<1x128xf32> to vector<16x128xf32>
    %27 = arith.addf %24, %26 : vector<16x128xf32>
    %c0_14 = arith.constant 0 : index
    %c0_15 = arith.constant 0 : index
    %28 = vector.load %arg6[%c0_14, %c0_15] : memref<16x128xf32, #tpu.memory_space<vmem>>, vector<16x128xf32>
    tpu.vector_store %arg6[%c0_14, %c0_15], %27 {strides = array<i32>} : memref<16x128xf32, #tpu.memory_space<vmem>>, vector<16x128xf32>,
    return
  }
  func.func @transform_0(%arg0: i32) -> (i32, i32) {
    %c0_i32 = arith.constant 0 : i32
    %c0_i32_0 = arith.constant 0 : i32
    return %arg0, %c0_i32 : i32, i32
  }
  func.func @transform_1(%arg0: i32) -> (i32, i32) {
    %c0_i32 = arith.constant 0 : i32
    %c0_i32_0 = arith.constant 0 : i32
    %c0_i32_1 = arith.constant 0 : i32
    return %c0_i32, %c0_i32_0 : i32, i32
  }
  func.func @transform_2(%arg0: i32) -> (i32, i32) {
    %c0_i32 = arith.constant 0 : i32
    %c0_i32_0 = arith.constant 0 : i32
    %c0_i32_1 = arith.constant 0 : i32
    return %c0_i32, %c0_i32_0 : i32, i32
  }
  func.func @transform_3(%arg0: i32) -> (i32, i32) {
    %c0_i32 = arith.constant 0 : i32
    %c0_i32_0 = arith.constant 0 : i32
    %c0_i32_1 = arith.constant 0 : i32
    return %c0_i32, %c0_i32_0 : i32, i32
  }
  func.func @transform_4(%arg0: i32) -> (i32, i32) {
    %c0_i32 = arith.constant 0 : i32
    %c0_i32_0 = arith.constant 0 : i32
    %c0_i32_1 = arith.constant 0 : i32
    return %c0_i32, %c0_i32_0 : i32, i32
  }
  func.func @transform_5(%arg0: i32) -> (i32, i32) {
    %c0_i32 = arith.constant 0 : i32
    %c0_i32_0 = arith.constant 0 : i32
    return %arg0, %c0_i32 : i32, i32
  }
}

</mosaic_0001>

<bundles_post_ra>
// kernel: tpu_custom_call.1
= control target key start
LH: loop header
LB: loop body
LE: loop exit
PB: predicated region body
PF: predicated region fallthrough
CT: control target
= control target key end

     0   :  { %10 = vsyncpa [#allocation3], 0  ;;  %s1201_s0 = inlined_call_operand.hbm [shape: f32[32,128], index: 0, kind: input, shape index: {}]   ;;  %s1202_s1 = inlined_call_operand.hbm [shape: f32[128,256], index: 1, kind: input, shape index: {}]   ;;  %s1203_s2 = inlined_call_operand.vmem [shape: f32[1,256], index: 2, kind: input, shape index: {}]   ;;  %s1204_s3 = inlined_call_operand.hbm [shape: f32[256,128], index: 3, kind: input, shape index: {}]   ;;  %s1205_s4 = inlined_call_operand.vmem [shape: f32[1,128], index: 4, kind: input, shape index: {}]   ;;  %s1206_s5 = inlined_call_operand.hbm [shape: f32[32,128], index: 5, kind: output, shape index: {}]  }
   0x1   :  { %12 = vsyncpa [#allocation3 + $0x1], 0 }
   0x2   :  { %13 = vsyncpa [#allocation6], 0 }
   0x3   :  { %14 = vsyncpa [#allocation4], 0 }
   0x4   :  { %16 = vsyncpa [#allocation4 + $0x1], 0  ;;  %s947_s18 = smov 0   ;;  %s949_s19 = smov 0  }
   0x5   :  { %s951_s20 = smov 0   ;;  %s953_s21 = smov 0  }
   0x6 LB: > { %s968_s22 = sadd.s32 4294967295, %s904_s21   ;;  %s623_s23 = sadd.s32 4294967294, %s904_s21   ;;  %s904_s21 = sphi %s953_s21, %s1226_s21   ;;  %s900_s20 = sphi %s951_s20, %s1225_s20   ;;  %s896_s19 = sphi %s949_s19, %s1224_s19   ;;  %s892_s18 = sphi %s947_s18, %s1223_s18  }
   0x7   : > { %p42_p0 = scmp.ne.s32.totalorder %s896_s19, %s892_s18  ;;  %p1207_p1 = scmp.eq.s32.totalorder %s968_s22, 0 }
   0x8   : > { %p156_p3 = scmp.eq.s32.totalorder %s623_s23, 1  ;;  %p624_p5 = scmp.ge.s32.totalorder %s904_s21, 1 }
   0x9   : > { %p977_p4 = por %p1207_p1, %p42_p0  ;;  %p163_p7 = scmp.lt.s32.totalorder %s904_s21, 3 }
   0xa   : > { %p982_p6 = por %p156_p3, %p42_p0  ;;  %s906_s27 = smov [#allocation5]  }
   0xb   : > { %s1210_s24 = scalar_select %p977_p4, 1, 0 }
   0xc   : > { %s1211_s25 = scalar_select %p982_p6, 1, 0 }
   0xd   : > { %p987_p8 = pnand %p624_p5, %p163_p7  ;;  %s175_s28 = sshll.u32 %s906_s27, 4  ;;  %s991_s28 = int_to_ptr.vmem [resolvable:$true] %s175_s28 }
   0xe   : > { %s907_s30 = smov [#allocation7]   ;;  %s748_s9 = scalar_lea.hbm %s1202_s1, 4096 }
   0xf   : > { %p678_p9 = pneg %p987_p8  ;;  %s191_s6 = sshll.u32 %s907_s30, 4  ;;  %s1002_s6 = int_to_ptr.vmem [resolvable:$true] %s191_s6 }
  0x10   : > { %p749_p12 = scmp.ne.s32.totalorder %s1202_s1, %s748_s9  ;;  %p755_p5 = scmp.lt.u32.totalorder %s748_s9, %s1202_s1 }
  0x11   : > { %p998_p11 = pnand %p678_p9, %p1207_p1 }
  0x13   : > { %p750_p13 = pneg %p998_p11 }
  0x15   : > { %p751_p0 = pnand %p750_p13, %p749_p12 }
  0x17   : > { %p752_p3 = pneg %p751_p0 }
  0x19   : > { %p757_p7 = pnand %p755_p5, %p752_p3 }
  0x1b   : > { %760 = shalt.err (!%p757_p7)
}
  0x1c   : > { %s761_s14 = scalar_lea.vmem %s991_s28, 4096  ;;  %p769_p2 = scmp.lt.s32.totalorder %s991_s28, %s991_s28 }
  0x1d   : > { %p762_p9 = scmp.ne.s32.totalorder %s991_s28, %s761_s14  ;;  %p770_p12 = scmp.lt.s32.totalorder %s761_s14, %s761_s14 }
  0x1f   : > { %p764_p10 = pnand %p762_p9, %p750_p13  ;;  %p771_p0 = por %p770_p12, %p769_p2 }
  0x21   : > { %p765_p1 = pneg %p764_p10 }
  0x23   : > { %p772_p6 = pnand %p771_p0, %p765_p1 }
  0x25   : > { %775 = shalt.err (!%p772_p6)
}
  0x26   : > { %s908_s15 = smov 256   ;;  %s909_s16 = smov 16  }
  0x27   : > { %681 = dma.hbm_to_vmem [thread:$0]  (!%p998_p11), %s1202_s1, 4096, %s991_s28, [#allocation6], %s908_s15, %s908_s15, %s909_s16  }
  0x28   : > { %s776_s7 = scalar_lea.hbm %s1204_s3, 4096 }
  0x29   : > { %p777_p2 = scmp.ne.s32.totalorder %s1204_s3, %s776_s7  ;;  %p783_p10 = scmp.lt.u32.totalorder %s776_s7, %s1204_s3 }
  0x2b   : > { %p779_p1 = pnand %p777_p2, %p750_p13 }
  0x2d   : > { %p780_p6 = pneg %p779_p1 }
  0x2f   : > { %p785_p3 = pnand %p783_p10, %p780_p6 }
  0x31   : > { %788 = shalt.err (!%p785_p3)
}
  0x32   : > { %s789_s28 = scalar_lea.vmem %s1002_s6, 4096  ;;  %p797_p12 = scmp.lt.s32.totalorder %s1002_s6, %s1002_s6 }
  0x33   : > { %p790_p5 = scmp.ne.s32.totalorder %s1002_s6, %s789_s28  ;;  %p798_p0 = scmp.lt.s32.totalorder %s789_s28, %s789_s28 }
  0x35   : > { %p792_p7 = pnand %p790_p5, %p750_p13  ;;  %p799_p2 = por %p798_p0, %p797_p12 }
  0x37   : > { %p793_p9 = pneg %p792_p7 }
  0x39   : > { %p800_p1 = pnand %p799_p2, %p793_p9 }
  0x3b   : > { %803 = shalt.err (!%p800_p1)
}
  0x3c   : > { %s910_s12 = smov 128   ;;  %s911_s13 = smov 8  }
  0x3d   : > { %684 = dma.hbm_to_vmem [thread:$0]  (!%p998_p11), %s1204_s3, 4096, %s1002_s6, [#allocation6], %s910_s12, %s910_s12, %s911_s13  }
  0x3e   : > { %s1060_s16 = sadd.s32 1, %s904_s21   ;;  %s29_s23 = sadd.s32 1, %s900_s20 }
  0x3f   : > { %s26_s17 = ssub.s32 %s904_s21, %s1060_s16  ;;  %p36_p6 = scmp.ne.s32.totalorder %s900_s20, %s896_s19 }
  0x40   : > { %p27_p13 = scmp.eq.s32.totalorder %s26_s17, 0  ;;  %p37_p10 = scmp.eq.s32.totalorder %s904_s21, 0 }
  0x41   : > { %p1214_p5 = scmp.eq.s32.totalorder %s968_s22, 1  ;;  %p695_p9 = scmp.lt.s32.totalorder %s904_s21, 2 }
  0x42   : > { %s1069_s27 = scalar_select %p27_p13, %s900_s20, %s29_s23  }
  0x43   : > { %p38_p3 = por %p37_p10, %p36_p6  ;;  %p1073_p7 = por %p1214_p5, %p36_p6 }
  0x44   : > { %s208_s30 = sand.u32 1, %s900_s20   ;;  %s642_s6 = sshll.u32 %s904_s21, 8 }
  0x45   : > { %s1215_s29 = scalar_select %p1073_p7, 1, 0 }
  0x46   : > { %s628_s7 = sshll.u32 %s208_s30, 4  ;;  %s1083_s10 = scalar_lea.hbm %s1201_s0, %s642_s6 }
  0x47   : > { %s212_s11 = scalar_lea.vmem [#allocation2], %s628_s7  ;;  %p1087_p11 = pnand %p695_p9, %p38_p3 }
  0x48   : > { %s219_s28 = sshll.u32 %s212_s11, 4  ;;  %s1091_s15 = scalar_lea.sflag [#allocation3], %s208_s30  ;;  %s1085_s28 = int_to_ptr.vmem [resolvable:$true] %s219_s28 }
  0x49   : > { %s804_s17 = scalar_lea.hbm %s1083_s10, 256  ;;  %p806_p0 = pneg %p1087_p11 }
  0x4a   : > { %p805_p12 = scmp.ne.s32.totalorder %s1083_s10, %s804_s17  ;;  %s809_s6 = scalar_lea.hbm %s1201_s0, 512 }
  0x4b   : > { %p810_p13 = scmp.lt.u32.totalorder %s1083_s10, %s1201_s0  ;;  %p811_p6 = scmp.lt.u32.totalorder %s809_s6, %s804_s17 }
  0x4c   : > { %p807_p2 = pnand %p806_p0, %p805_p12  ;;  %p813_p3 = scmp.lt.u32.totalorder %s804_s17, %s1083_s10 }
  0x4d   : > { %p812_p10 = por %p811_p6, %p810_p13 }
  0x4e   : > { %p808_p1 = pneg %p807_p2 }
  0x4f   : > { %p814_p5 = por %p813_p3, %p812_p10 }
  0x51   : > { %p815_p9 = pnand %p814_p5, %p808_p1 }
  0x53   : > { %818 = shalt.err (!%p815_p9)
}
  0x54   : > { %s819_s30 = scalar_lea.vmem %s1085_s28, 256  ;;  %s912_s11 = smov [#allocation2]  }
  0x55   : > { %p820_p12 = scmp.ne.s32.totalorder %s1085_s28, %s819_s30  ;;  %s824_s23 = sshll.u32 %s912_s11, 4  ;;  %s825_s23 = int_to_ptr.vmem [resolvable:$false] %s824_s23 }
  0x56   : > { %s826_s7 = scalar_lea.vmem %s825_s23, 512  ;;  %p827_p4 = scmp.lt.s32.totalorder %s1085_s28, %s825_s23 }
  0x57   : > { %p822_p2 = pnand %p820_p12, %p806_p0  ;;  %p828_p13 = scmp.lt.s32.totalorder %s826_s7, %s819_s30 }
  0x59   : > { %p823_p7 = pneg %p822_p2  ;;  %p829_p6 = por %p828_p13, %p827_p4 }
  0x5b   : > { %p830_p10 = pnand %p829_p6, %p823_p7 }
  0x5d   : > { %833 = shalt.err (!%p830_p10)
}
  0x5e   : > { %688 = dma.hbm_to_vmem [thread:$0]  (!%p1087_p11), %s1083_s10, 256, %s1085_s28, %s1091_s15, %s910_s12, %s910_s12, %s911_s13  }
  0x5f   : > { %231 = sbr.rel (%p987_p8) target bundleno = 620 (0x26c), region = 40  ;;  %s1125_s17 = sand.u32 (!%p987_p8), 1, %s896_s19  }
  0x60   : > { %s632_s6 = sshll.u32 (!%p987_p8), %s1125_s17, 4  ;;  %s234_s8 = scalar_lea.sflag (!%p987_p8), [#allocation3], %s1125_s17 }
  0x61   : > { %s1131_s14 = scalar_lea.vmem (!%p987_p8), [#allocation2], %s632_s6  ;;  %p1217_p4 = scmp.ne.s32.totalorder (!%p987_p8), %s1210_s24, 0 }
  0x66   : > { %879 = dma.done.wait (%p1217_p4), %s234_s8, 256  }
  0x67   : > { %881 = vsyncadd (%p1217_p4), %s234_s8, 4294967040  ;;  %p1218_p7 = scmp.eq.s32.totalorder %s968_s22, 0 }
  0x69   : > { %883 = dma.done.wait (%p1218_p7), [#allocation6], 8192   ;;  %p1219_p8 = pmov %p1218_p7 }
  0x6a   : > { %v913_v0 = vmov 0   ;;  %v279_v1 = vld [vmem:[#allocation5 + $0x8] sm:$0xff]  ;;  %v281_v2 = vld [vmem:[#allocation5 + $0x18] sm:$0xff]  ;;  %v278_v3 = vld [vmem:[#allocation5] sm:$0xff]  ;;  %s271_s10 = scalar_lea.vmem [#allocation8], %s632_s6  ;;  %s643_s15 = sshll.u32 %s968_s22, 8 }
  0x6b   : > { %885 = vsyncadd (%p1219_p8), [#allocation6], 4294959104  ;;  %370 = vmatprep.mubr.bf16.mxu0 %v913_v0  ;;  %v311_v4 = vpack.c.bf16 %v281_v2, %v279_v1  ;;  %v280_v5 = vld [vmem:[#allocation5 + $0x10] sm:$0xff]  ;;  %v283_v6 = vld [vmem:[#allocation5 + $0x28] sm:$0xff]  ;;  %s531_s28 = sshll.u32 %s271_s10, 4  ;;  %s1157_s11 = scalar_lea.hbm %s1206_s5, %s643_s15  ;;  %s1152_s28 = int_to_ptr.vmem [resolvable:$true] %s531_s28 }
  0x6c   : > { %v285_v7 = vld [vmem:[#allocation5 + $0x38] sm:$0xff]  ;;  %v310_v8 = vpack.c.bf16 %v280_v5, %v278_v3  ;;  %v282_v10 = vld [vmem:[#allocation5 + $0x20] sm:$0xff]  ;;  %v284_v11 = vld [vmem:[#allocation5 + $0x30] sm:$0xff]  ;;  %s518_s23 = scalar_lea.sflag [#allocation4], %s1125_s17  ;;  %s834_s7 = scalar_lea.vmem %s1152_s28, 256 }
  0x6d   : > { %v313_v9 = vpack.c.bf16 %v285_v7, %v283_v6  ;;  %v287_v12 = vld [vmem:[#allocation5 + $0x48] sm:$0xff]  ;;  %338 = vmatprep.subr.bf16.mxu0 %v311_v4  ;;  %v289_v13 = vld [vmem:[#allocation5 + $0x58] sm:$0xff]  ;;  %v312_v14 = vpack.c.bf16 %v284_v11, %v282_v10  ;;  %v286_v16 = vld [vmem:[#allocation5 + $0x40] sm:$0xff]  ;;  %p835_p11 = scmp.ne.s32.totalorder %s1152_s28, %s834_s7  ;;  %p1220_p0 = scmp.ne.s32.totalorder %s1215_s29, 0 }
  0x6e   : > { %339 = vmatpush1.bf16.msra.mxu0 %v310_v8  ;;  %v315_v15 = vpack.c.bf16 %v289_v13, %v287_v12  ;;  %v288_v17 = vld [vmem:[#allocation5 + $0x50] sm:$0xff]  ;;  %v291_v18 = vld [vmem:[#allocation5 + $0x68] sm:$0xff]  ;;  %v293_v19 = vld [vmem:[#allocation5 + $0x78] sm:$0xff]  ;;  %s914_s22 = smov [#allocation8]  }
  0x6f   : > { %340 = vmatprep.subr.bf16.mxu0 %v313_v9  ;;  %v314_v20 = vpack.c.bf16 %v288_v17, %v286_v16  ;;  %v317_v21 = vpack.c.bf16 %v293_v19, %v291_v18  ;;  %v290_v22 = vld [vmem:[#allocation5 + $0x60] sm:$0xff]  ;;  %v292_v23 = vld [vmem:[#allocation5 + $0x70] sm:$0xff]  ;;  %v295_v24 = vld [vmem:[#allocation5 + $0x88] sm:$0xff]  ;;  %p836_p1 = pnand %p835_p11, %p1220_p0  ;;  %s838_s6 = sshll.u32 %s914_s22, 4  ;;  %s839_s6 = int_to_ptr.vmem [resolvable:$false] %s838_s6 }
  0x70   : > { %v297_v25 = vld [vmem:[#allocation5 + $0x98] sm:$0xff]  ;;  %v316_v26 = vpack.c.bf16 %v292_v23, %v290_v22  ;;  %v294_v28 = vld [vmem:[#allocation5 + $0x80] sm:$0xff]  ;;  %v296_v29 = vld [vmem:[#allocation5 + $0x90] sm:$0xff]  ;;  %s840_s8 = scalar_lea.vmem %s839_s6, 512  ;;  %p841_p5 = scmp.lt.s32.totalorder %s1152_s28, %s839_s6 }
  0x71   : > { %v319_v27 = vpack.c.bf16 %v297_v25, %v295_v24  ;;  %v299_v30 = vld [vmem:[#allocation5 + $0xa8] sm:$0xff]  ;;  %v301_v31 = vld [vmem:[#allocation5 + $0xb8] sm:$0xff]  ;;  %v318_v32 = vpack.c.bf16 %v296_v29, %v294_v28  ;;  %v298_v34 = vld [vmem:[#allocation5 + $0xa0] sm:$0xff]  ;;  %p837_p3 = pneg %p836_p1  ;;  %p842_p9 = scmp.lt.s32.totalorder %s840_s8, %s834_s7 }
  0x72   : > { %341 = vmatpush1.bf16.msra.mxu0 %v312_v14  ;;  %v321_v33 = vpack.c.bf16 %v301_v31, %v299_v30  ;;  %v300_v35 = vld [vmem:[#allocation5 + $0xb0] sm:$0xff]  ;;  %v303_v36 = vld [vmem:[#allocation5 + $0xc8] sm:$0xff]  ;;  %v305_v37 = vld [vmem:[#allocation5 + $0xd8] sm:$0xff] }
  0x73   : > { %342 = vmatprep.subr.bf16.mxu0 %v315_v15  ;;  %v320_v38 = vpack.c.bf16 %v300_v35, %v298_v34  ;;  %v323_v39 = vpack.c.bf16 %v305_v37, %v303_v36  ;;  %v302_v40 = vld [vmem:[#allocation5 + $0xc0] sm:$0xff]  ;;  %v304_v41 = vld [vmem:[#allocation5 + $0xd0] sm:$0xff]  ;;  %v307_v42 = vld [vmem:[#allocation5 + $0xe8] sm:$0xff]  ;;  %v328_v36 = vlaneseq  ;;  %p843_p12 = por %p842_p9, %p841_p5 }
  0x74   : > { %v309_v43 = vld [vmem:[#allocation5 + $0xf8] sm:$0xff]  ;;  %v322_v44 = vpack.c.bf16 %v304_v41, %v302_v40  ;;  %v306_v46 = vld [vmem:[#allocation5 + $0xe0] sm:$0xff]  ;;  %v308_v47 = vld [vmem:[#allocation5 + $0xf0] sm:$0xff] }
  0x75   : > { %v325_v45 = vpack.c.bf16 %v309_v43, %v307_v42  ;;  %v324_v48 = vpack.c.bf16 %v308_v47, %v306_v46  ;;  %v275_v49 = vld [vmem:[%s1131_s14] sm:$0xff]  ;;  %v276_v50 = vld [vmem:[%s1131_s14 + $0x8] sm:$0xff]  ;;  %v329_v37 = vshrl.u32 %v328_v36, 7  ;;  %p844_p2 = pnand %p843_p12, %p837_p3 }
  0x76   : > { %343 = vmatpush1.bf16.msra.mxu0 %v314_v20  ;;  %v277_v51 = vpack.c.bf16 %v276_v50, %v275_v49  ;;  %v435_v52 = vld [vmem:[#allocation7 + $0x80] sm:$0xff]  ;;  %v436_v53 = vld [vmem:[#allocation7 + $0x88] sm:$0xff]  ;;  %v437_v58 = vld [vmem:[#allocation7 + $0x90] sm:$0xff] }
  0x77   : > { %344 = vmatprep.subr.bf16.mxu0 %v317_v21  ;;  %v459_v54 = vpack.c.bf16 %v436_v53, %v435_v52  ;;  %v419_v55 = vld [vmem:[#allocation7] sm:$0xff]  ;;  %v420_v56 = vld [vmem:[#allocation7 + $0x8] sm:$0xff]  ;;  %v438_v59 = vld [vmem:[#allocation7 + $0x98] sm:$0xff]  ;;  %v334_v40 = vsub.s32 1, %v329_v37 }
  0x78   : > { %v451_v57 = vpack.c.bf16 %v420_v56, %v419_v55  ;;  %v460_v60 = vpack.c.bf16 %v438_v59, %v437_v58  ;;  %v421_v61 = vld [vmem:[#allocation7 + $0x10] sm:$0xff]  ;;  %v422_v62 = vld [vmem:[#allocation7 + $0x18] sm:$0xff]  ;;  %v439_v0 = vld [vmem:[#allocation7 + $0xa0] sm:$0xff] }
  0x79   : > { %644 = vmatprep.subr.bf16.mxu1 %v459_v54  ;;  %v452_v63 = vpack.c.bf16 %v422_v62, %v421_v61  ;;  %v440_v1 = vld [vmem:[#allocation7 + $0xa8] sm:$0xff]  ;;  %v423_v3 = vld [vmem:[#allocation7 + $0x20] sm:$0xff]  ;;  %v441_v6 = vld [vmem:[#allocation7 + $0xb0] sm:$0xff] }
  0x7a   : > { %345 = vmatpush1.bf16.msra.mxu0 %v316_v26  ;;  %645 = vmatpush3.bf16.msra.mxu1 %v451_v57  ;;  %v461_v2 = vpack.c.bf16 %v440_v1, %v439_v0  ;;  %v424_v4 = vld [vmem:[#allocation7 + $0x28] sm:$0xff]  ;;  %v442_v7 = vld [vmem:[#allocation7 + $0xb8] sm:$0xff]  ;;  %v425_v8 = vld [vmem:[#allocation7 + $0x30] sm:$0xff] }
  0x7b   : > { %346 = vmatprep.subr.bf16.mxu0 %v319_v27  ;;  %646 = vmatprep.subr.bf16.mxu1 %v460_v60  ;;  %v453_v5 = vpack.c.bf16 %v424_v4, %v423_v3  ;;  %v462_v9 = vpack.c.bf16 %v442_v7, %v441_v6  ;;  %v426_v10 = vld [vmem:[#allocation7 + $0x38] sm:$0xff]  ;;  %v443_v11 = vld [vmem:[#allocation7 + $0xc0] sm:$0xff]  ;;  %v444_v12 = vld [vmem:[#allocation7 + $0xc8] sm:$0xff] }
  0x7c   : > { %v454_v13 = vpack.c.bf16 %v426_v10, %v425_v8  ;;  %v463_v14 = vpack.c.bf16 %v444_v12, %v443_v11  ;;  %v427_v15 = vld [vmem:[#allocation7 + $0x40] sm:$0xff]  ;;  %v428_v16 = vld [vmem:[#allocation7 + $0x48] sm:$0xff]  ;;  %v445_v17 = vld [vmem:[#allocation7 + $0xd0] sm:$0xff] }
  0x7d   : > { %v446_v18 = vld [vmem:[#allocation7 + $0xd8] sm:$0xff]  ;;  %v455_v19 = vpack.c.bf16 %v428_v16, %v427_v15  ;;  %v429_v21 = vld [vmem:[#allocation7 + $0x50] sm:$0xff]  ;;  %v447_v23 = vld [vmem:[#allocation7 + $0xe0] sm:$0xff] }
  0x7e   : > { %347 = vmatpush1.bf16.msra.mxu0 %v318_v32  ;;  %647 = vmatpush3.bf16.msra.mxu1 %v452_v63  ;;  %v464_v20 = vpack.c.bf16 %v446_v18, %v445_v17  ;;  %v430_v22 = vld [vmem:[#allocation7 + $0x58] sm:$0xff]  ;;  %v448_v24 = vld [vmem:[#allocation7 + $0xe8] sm:$0xff]  ;;  %v431_v27 = vld [vmem:[#allocation7 + $0x60] sm:$0xff] }
  0x7f   : > { %348 = vmatprep.subr.bf16.mxu0 %v321_v33  ;;  %648 = vmatprep.subr.bf16.mxu1 %v461_v2  ;;  %v456_v25 = vpack.c.bf16 %v430_v22, %v429_v21  ;;  %v465_v26 = vpack.c.bf16 %v448_v24, %v447_v23  ;;  %v432_v28 = vld [vmem:[#allocation7 + $0x68] sm:$0xff]  ;;  %v449_v29 = vld [vmem:[#allocation7 + $0xf0] sm:$0xff]  ;;  %v450_v30 = vld [vmem:[#allocation7 + $0xf8] sm:$0xff] }
  0x80   : > { %v457_v31 = vpack.c.bf16 %v432_v28, %v431_v27  ;;  %v466_v32 = vpack.c.bf16 %v450_v30, %v449_v29  ;;  %v433_v33 = vld [vmem:[#allocation7 + $0x70] sm:$0xff]  ;;  %v434_v34 = vld [vmem:[#allocation7 + $0x78] sm:$0xff] }
  0x81   : > { %v458_v35 = vpack.c.bf16 %v434_v34, %v433_v33 }
  0x82   : > { %349 = vmatpush1.bf16.msra.mxu0 %v320_v38  ;;  %649 = vmatpush3.bf16.msra.mxu1 %v453_v5  ;;  %v330_v38 = vsub.s32 0, %v329_v37 }
  0x83   : > { %350 = vmatprep.subr.bf16.mxu0 %v323_v39  ;;  %650 = vmatprep.subr.bf16.mxu1 %v462_v9  ;;  %v326_v39 = vld [vmem:[%s1203_s2] sm:$0x3] }
  0x84   : > { %v331_v41 = vrot.slane %v326_v39, %v330_v38  ;;  %v335_v42 = vrot.slane %v326_v39, %v334_v40 }
  0x86   : > { %351 = vmatpush1.bf16.msra.mxu0 %v322_v44  ;;  %651 = vmatpush3.bf16.msra.mxu1 %v454_v13 }
  0x87   : > { %352 = vmatprep.subr.bf16.mxu0 %v325_v45  ;;  %652 = vmatprep.subr.bf16.mxu1 %v463_v14 }
  0x8a   : > { %353 = vmatpush1.bf16.msra.mxu0 %v324_v48  ;;  %653 = vmatpush3.bf16.msra.mxu1 %v455_v19 }
  0x8b   : > { %654 = vmatprep.subr.bf16.mxu1 %v464_v20 }
  0x8d   : > { %371 = vmatmul.mubr.bf16.vlgmr.msra.gmra.mrb[0].mxu0 %v277_v51 }
  0x8e   : > { %655 = vmatpush3.bf16.msra.mxu1 %v456_v25 }
  0x8f   : > { %656 = vmatprep.subr.bf16.mxu1 %v465_v26  ;;  %v636_v26 = vld [vmem:[%s1205_s4] ss:$0 sm:$0xff] }
  0x92   : > { %657 = vmatpush3.bf16.msra.mxu1 %v457_v31 }
  0x93   : > { %658 = vmatprep.subr.bf16.mxu1 %v466_v32 }
  0x96   : > { %659 = vmatpush3.bf16.msra.mxu1 %v458_v35 }
 0x160   : > { %v372_v43 = vpop.f32.mrb[0].mxu0 }
 0x161   : > { %v373_v44 = vadd.f32 %v372_v43, %v331_v41  ;;  %v374_v45 = vpop.f32.mrb[1].mxu0 }
 0x162   : > { %v375_v46 = vadd.f32 %v374_v45, %v335_v42  ;;  %v376_v47 = vpop.f32.mrb[2].mxu0 }
 0x163   : > { %v385_v48 = vmul.f32 0.044715, %v373_v44  ;;  %v377_v49 = vadd.f32 %v376_v47, %v331_v41  ;;  %v378_v50 = vpop.f32.mrb[3].mxu0  ;;  %v381_v13 = vmul.f32 0.5, %v373_v44 }
 0x164   : > { %v386_v51 = vmul.f32 0.044715, %v375_v46  ;;  %v379_v52 = vadd.f32 %v378_v50, %v335_v42  ;;  %v382_v16 = vmul.f32 0.5, %v375_v46 }
 0x165   : > { %v389_v53 = vmul.f32 %v385_v48, %v373_v44  ;;  %v387_v54 = vmul.f32 0.044715, %v377_v49  ;;  %v383_v14 = vmul.f32 0.5, %v377_v49 }
 0x166   : > { %v388_v55 = vmul.f32 0.044715, %v379_v52  ;;  %v390_v56 = vmul.f32 %v386_v51, %v375_v46  ;;  %v384_v17 = vmul.f32 0.5, %v379_v52 }
 0x167   : > { %v393_v57 = vmul.f32 %v389_v53, %v373_v44  ;;  %v391_v58 = vmul.f32 %v387_v54, %v377_v49 }
 0x168   : > { %v392_v59 = vmul.f32 %v388_v55, %v379_v52  ;;  %v394_v60 = vmul.f32 %v390_v56, %v375_v46 }
 0x169   : > { %v395_v61 = vmul.f32 %v391_v58, %v377_v49  ;;  %v397_v62 = vadd.f32 %v393_v57, %v373_v44 }
 0x16a   : > { %v396_v63 = vmul.f32 %v392_v59, %v379_v52  ;;  %v398_v0 = vadd.f32 %v394_v60, %v375_v46 }
 0x16b   : > { %v399_v1 = vadd.f32 %v395_v61, %v377_v49  ;;  %v401_v2 = vmul.f32 0.7978846, %v397_v62 }
 0x16c   : > { %v400_v3 = vadd.f32 %v396_v63, %v379_v52  ;;  %v402_v4 = vmul.f32 0.7978846, %v398_v0 }
 0x16d   : > { %v403_v5 = vmul.f32 0.7978846, %v399_v1  ;;  %740 = vtanh.f32 %v401_v2 }
 0x16e   : > { %v404_v6 = vmul.f32 0.7978846, %v400_v3  ;;  %742 = vtanh.f32 %v402_v4 }
 0x16f   : > { %744 = vtanh.f32 %v403_v5 }
 0x170   : > { %746 = vtanh.f32 %v404_v6 }
 0x177   : > { %v741_v7 = vpop.eup %740 }
 0x178   : > { %v743_v8 = vpop.eup %742  ;;  %v409_v9 = vadd.f32 1.0, %v741_v7 }
 0x179   : > { %v745_v10 = vpop.eup %744  ;;  %v410_v11 = vadd.f32 1.0, %v743_v8 }
 0x17a   : > { %v747_v12 = vpop.eup %746  ;;  %v411_v15 = vadd.f32 1.0, %v745_v10  ;;  %v413_v19 = vmul.f32 %v409_v9, %v381_v13 }
 0x17b   : > { %v412_v18 = vadd.f32 1.0, %v747_v12  ;;  %v414_v21 = vmul.f32 %v410_v11, %v382_v16 }
 0x17c   : > { %v415_v20 = vmul.f32 %v411_v15, %v383_v14 }
 0x17d   : > { %v416_v22 = vmul.f32 %v412_v18, %v384_v17 }
 0x17e   : > { %v417_v23 = vpack.c.bf16 %v415_v20, %v413_v19 }
 0x17f   : > { %v418_v24 = vpack.c.bf16 %v416_v22, %v414_v21 }
 0x181   : > { %506 = vmatprep.mubr.bf16.mxu1 %v418_v24 }
 0x182   : > { %507 = vmatmul.mubr.bf16.vlgmr.msra.gmra.mrb[0].mxu1 %v417_v23 }
 0x255   : > { %v660_v25 = vpop.f32.mrb[0].mxu1 }
 0x256   : > { %v661_v27 = vpop.f32.mrb[1].mxu1 }
 0x257   : > { %v662_v28 = vadd.f32 %v661_v27, %v660_v25  ;;  %v663_v29 = vpop.f32.mrb[2].mxu1 }
 0x258   : > { %v664_v30 = vpop.f32.mrb[3].mxu1 }
 0x259   : > { %v509_v31 = vadd.f32 %v662_v28, %v636_v26  ;;  %v665_v32 = vadd.f32 %v664_v30, %v663_v29 }
 0x25b   : > { %515 = vst [vmem:[%s271_s10] sm:$0xff] %v509_v31  ;;  %v512_v33 = vadd.f32 %v665_v32, %v636_v26 }
 0x25d   : > { %516 = vst [vmem:[%s271_s10 + $0x8] sm:$0xff] %v512_v33 }
 0x25e   : > { %847 = shalt.err (!%p844_p2)
}
 0x25f   : > { %s848_s14 = scalar_lea.hbm %s1157_s11, 256  ;;  %s852_s12 = scalar_lea.hbm %s1206_s5, 512 }
 0x260   : > { %p849_p13 = scmp.ne.s32.totalorder %s1157_s11, %s848_s14  ;;  %p853_p4 = scmp.lt.u32.totalorder %s1157_s11, %s1206_s5 }
 0x261   : > { %p854_p7 = scmp.lt.u32.totalorder %s852_s12, %s848_s14  ;;  %p856_p11 = scmp.lt.u32.totalorder %s848_s14, %s1157_s11 }
 0x262   : > { %p850_p6 = pnand %p849_p13, %p1220_p0 }
 0x263   : > { %p855_p8 = por %p854_p7, %p853_p4 }
 0x264   : > { %p851_p10 = pneg %p850_p6 }
 0x265   : > { %p857_p1 = por %p856_p11, %p855_p8 }
 0x267   : > { %p858_p3 = pnand %p857_p1, %p851_p10 }
 0x269   : > { %861 = shalt.err (!%p858_p3)
}
 0x26a   : > { %s915_s15 = smov 128   ;;  %s916_s9 = smov 8  }
 0x26b   : > { %676 = dma.vmem_to_hbm [thread:$0]  (%p1220_p0), %s1152_s28, 256, %s1157_s11, %s518_s23, %s915_s15, %s915_s15, %s916_s9  }
 0x26c PF: > { %s546_s30 = sand.u32 1, %s892_s18   ;;  %p1221_p5 = scmp.ne.s32.totalorder %s1211_s25, 0 }
 0x26d   : > { %p1222_p9 = scmp.ge.s32.totalorder %s904_s21, 2  ;;  %s547_s7 = scalar_lea.sflag [#allocation4], %s546_s30 }
 0x26f   : > { %p690_p12 = pnand %p1222_p9, %p1221_p5 }
 0x271   : > { %887 = dma.done.wait (!%p690_p12), %s547_s7, 256  }
 0x272   : > { %889 = vsyncadd (!%p690_p12), %s547_s7, 4294967040  ;;  %p19_p2 = scmp.ge.s32.totalorder %s1060_s16, 4   ;;  %s1223_s18 = smov %s896_s19 }
 0x273   : > { %s1224_s19 = smov %s900_s20  ;;  %s1225_s20 = smov %s1069_s27 }
 0x274   : > { %s1226_s21 = smov %s1060_s16  ;;  %21 = sbr.rel (!%p19_p2) target bundleno = 6 (0x6), region = 93 }
 0x27b   :  { %552 = vsyncpa [#allocation3], 1 }
 0x27c   :  { %554 = vsyncpa [#allocation3 + $0x1], 1 }
 0x27d   :  { %555 = vsyncpa [#allocation6], 1 }
 0x27e   :  { %556 = vsyncpa [#allocation4], 1 }
 0x27f   :  { %558 = vsyncpa [#allocation4 + $0x1], 1 }

</bundles_post_ra>
